<compile_context>
chip_gen: v5e
topology: v5e:2x2
jax: 0.10.0
libtpu: 0.0.40
codegen_flags: <defaults>
</compile_context>

<pallas_src>
import functools

import jax
import jax.numpy as jnp
from jax.experimental import pallas as pl
from jax.experimental.pallas import tpu as pltpu


def _regression_loss_kernel(n_ref, x_ref, out_ref, *, l1_w, giou_w, tile):
    j = pl.program_id(0)
    nj = pl.num_programs(0)
    n = n_ref[0]                               # real (unpadded) box count (SMEM)

    @pl.when(j == 0)
    def _init():
        out_ref[...] = jnp.zeros_like(out_ref)

    x = x_ref[...].astype(jnp.float32)         # (8, tile): rows 0-3 pred, 4-7 tgt
    p = x[0:4, :]
    t = x[4:8, :]

    # validity mask over the global lane index (padded lanes are dropped)
    lane = j * tile + jax.lax.broadcasted_iota(jnp.int32, (1, tile), 1)
    valid = lane < n

    # ---- L1 term: per-box sum over the 4 coordinate rows -> (1, tile) ----
    l1_per_box = jnp.sum(jnp.abs(p - t), axis=0, keepdims=True)

    # ---- GIoU term (elementwise between matched boxes == diag of pairwise) ----
    p_lo, p_hi = p[0:2, :], p[2:4, :]          # (2, tile) each
    t_lo, t_hi = t[0:2, :], t[2:4, :]

    pwh = p_hi - p_lo
    twh = t_hi - t_lo
    area_p = pwh[0:1, :] * pwh[1:2, :]         # (1, tile)
    area_t = twh[0:1, :] * twh[1:2, :]

    # intersection (2-row min/max, clamp at 0)
    i_lo = jnp.maximum(p_lo, t_lo)
    i_hi = jnp.minimum(p_hi, t_hi)
    iwh = jnp.maximum(i_hi - i_lo, 0.0)
    inter = iwh[0:1, :] * iwh[1:2, :]

    # smallest enclosing box
    e_lo = jnp.minimum(p_lo, t_lo)
    e_hi = jnp.maximum(p_hi, t_hi)
    ewh = jnp.maximum(e_hi - e_lo, 0.0)
    enclose = ewh[0:1, :] * ewh[1:2, :]

    union = area_p + area_t - inter
    # clamp padded lanes before the divides so no inf/NaN is created at all
    union_s = jnp.where(valid, union, 1.0)
    enclose_s = jnp.where(valid, enclose, 1.0)

    iou = inter * pl.reciprocal(union_s, approx=False)
    giou = iou - (enclose_s - union_s) * pl.reciprocal(enclose_s, approx=False)
    giou_per_box = 1.0 - giou

    per_box = l1_w * l1_per_box + giou_w * giou_per_box
    per_box = jnp.where(valid, per_box, 0.0)

    out_ref[...] += jnp.sum(per_box, axis=1, keepdims=True)        # (1, 1)

    @pl.when(j == nj - 1)
    def _finalize():
        out_ref[...] *= 1.0 / n.astype(jnp.float32)


def regression_loss(predictions, targets, l1_weight=None, giou_weight=None):
    """Pallas TPU implementation of RegressionLoss.forward.

    predictions, targets: (N, 4) xyxy boxes. Returns a scalar float32 loss.
    """
    n = targets.shape[0]
    if n == 0:
        return jnp.float32(0.0)

    # `if self._l1_w:` in PyTorch — falsy (None / 0.0) means "don't scale".
    l1_w = float(l1_weight) if l1_weight else 1.0
    giou_w = float(giou_weight) if giou_weight else 1.0

    # Lane padding bucketed to powers of two >= 128 (fewer recompiles as the
    # matched-box count drifts; padded lanes are masked in-kernel).
    n_pad = max(128, int(pl.next_power_of_2(n)))
    tile = min(n_pad, 1024)                    # measured sweet spot for lane tiles
    grid = (n_pad // tile,)

    # Single packed (8, n_pad) operand in the inputs' native dtype
    # (bf16 inputs stay bf16 in HBM; the kernel upcasts once).
    dtype = jnp.result_type(predictions.dtype, targets.dtype)
    packed = jnp.concatenate(
        [jnp.transpose(predictions.astype(dtype)),
         jnp.transpose(targets.astype(dtype))], axis=0)            # (8, n)
    pad = n_pad - n
    if pad:
        packed = jnp.pad(packed, ((0, 0), (0, pad)))
    n_arr = jnp.array([n], dtype=jnp.int32)    # runtime count -> SMEM (prefetch)

    kernel = functools.partial(
        _regression_loss_kernel, l1_w=l1_w, giou_w=giou_w, tile=tile)

    out = pl.pallas_call(
        kernel,
        out_shape=jax.ShapeDtypeStruct((1, 1), jnp.float32),
        grid_spec=pltpu.PrefetchScalarGridSpec(
            num_scalar_prefetch=1,
            grid=grid,
            in_specs=[pl.BlockSpec((8, tile), lambda j, n_sm: (0, j))],
            out_specs=pl.BlockSpec((1, 1), lambda j, n_sm: (0, 0)),
        ),
        compiler_params=pltpu.CompilerParams(
            dimension_semantics=("arbitrary",),
            # let XLA fuse the cast/transpose/pad/concat producer straight into
            # the packed operand (no extra HBM round-trip for the inputs)
            allow_input_fusion=[False, True],
        ),
    )(n_arr, packed)
    return out[0, 0]


def _reference_loss(p, t, l1_weight=None, giou_weight=None):
    """Plain-JAX reference (mirrors the PyTorch module)."""
    n = t.shape[0]
    l1 = jnp.sum(jnp.abs(p - t)) / n
    if l1_weight:
        l1 = l1 * l1_weight
    area_p = (p[:, 2] - p[:, 0]) * (p[:, 3] - p[:, 1])
    area_t = (t[:, 2] - t[:, 0]) * (t[:, 3] - t[:, 1])
    iw = jnp.clip(jnp.minimum(p[:, 2], t[:, 2]) - jnp.maximum(p[:, 0], t[:, 0]), 0)
    ih = jnp.clip(jnp.minimum(p[:, 3], t[:, 3]) - jnp.maximum(p[:, 1], t[:, 1]), 0)
    inter = iw * ih
    union = area_p + area_t - inter
    iou = inter / union
    ew = jnp.maximum(p[:, 2], t[:, 2]) - jnp.minimum(p[:, 0], t[:, 0])
    eh = jnp.maximum(p[:, 3], t[:, 3]) - jnp.minimum(p[:, 1], t[:, 1])
    enclose = ew * eh
    giou = iou - (enclose - union) / enclose
    giou_loss = jnp.sum(1.0 - giou) / n
    if giou_weight:
        giou_loss = giou_loss * giou_weight
    return l1 + giou_loss


def _make_boxes(key, n):
    k1, k2 = jax.random.split(key)
    xy = jax.random.uniform(k1, (n, 2), jnp.float32, 0.0, 0.5)
    wh = jax.random.uniform(k2, (n, 2), jnp.float32, 0.1, 0.5)
    return jnp.concatenate([xy, xy + wh], axis=1)      # valid xyxy (x1>=x0, y1>=y0)


if __name__ == "__main__":
    key = jax.random.PRNGKey(0)
    kp, kt, kp2, kt2 = jax.random.split(key, 4)

    # Small case (exercises lane padding/masking: 8 -> 128, single-tile grid).
    N = 8
    predictions = _make_boxes(kp, N)
    targets = _make_boxes(kt, N)

    l1_weight, giou_weight = 5.0, 2.0
    loss = regression_loss(predictions, targets, l1_weight, giou_weight)
    jax.block_until_ready(loss)
    ref = _reference_loss(predictions, targets, l1_weight, giou_weight)
    assert jnp.allclose(loss, ref, rtol=1e-5, atol=1e-5), (loss, ref)

    # Un-weighted path (weights None -> no scaling).
    loss2 = regression_loss(predictions, targets)
    jax.block_until_ready(loss2)
    ref2 = _reference_loss(predictions, targets)
    assert jnp.allclose(loss2, ref2, rtol=1e-5, atol=1e-5), (loss2, ref2)

    # Multi-tile case (exercises the accumulator across grid steps:
    # 1500 -> n_pad 2048, tile 1024, grid (2,)).
    N2 = 1500
    predictions2 = _make_boxes(kp2, N2)
    targets2 = _make_boxes(kt2, N2)
    loss3 = regression_loss(predictions2, targets2, l1_weight, giou_weight)
    jax.block_until_ready(loss3)
    ref3 = _reference_loss(predictions2, targets2, l1_weight, giou_weight)
    assert jnp.allclose(loss3, ref3, rtol=1e-4, atol=1e-4), (loss3, ref3)

    print("KERNEL_OK")
</pallas_src>

<mosaic_0001>
module attributes {stable_mosaic.version = 11 : i64} {
  func.func @_regression_loss_kernel(%arg0: i32, %arg1: memref<1xi32, #tpu.memory_space<smem>>, %arg2: memref<8x128xf32, #tpu.memory_space<vmem>>, %arg3: memref<1x1xf32, #tpu.memory_space<vmem>>) attributes {dimension_semantics = [#tpu.dimension_semantics<arbitrary>], iteration_bounds = array<i64: 1>, scalar_prefetch = 1 : i64, scratch_operands = 0 : i64, tpu.core_type = #tpu.core_type<tc>, window_params = [{transform_indices = @transform_0, window_bounds = array<i64: 8, 128>}, {pipeline_mode = #tpu.pipeline_mode<synchronous>, transform_indices = @transform_1, window_bounds = array<i64: 1, 1>}]} {
    %c0 = arith.constant 0 : index
    %0 = memref.load %arg1[%c0] : memref<1xi32, #tpu.memory_space<smem>>
    %c0_i32 = arith.constant 0 : i32
    %1 = arith.cmpi eq, %arg0, %c0_i32 : i32
    %2 = arith.extui %1 : i1 to i32
    %c0_i32_0 = arith.constant 0 : i32
    %3 = arith.cmpi ne, %2, %c0_i32_0 : i32
    scf.if %3 {
      %cst_18 = arith.constant 0.000000e+00 : f32
      %74 = vector.broadcast %cst_18 : f32 to vector<1x1xf32>
      %c0_19 = arith.constant 0 : index
      %c0_20 = arith.constant 0 : index
      %75 = vector.load %arg3[%c0_19, %c0_20] : memref<1x1xf32, #tpu.memory_space<vmem>>, vector<1x1xf32>
      tpu.vector_store %arg3[%c0_19, %c0_20], %74 {strides = array<i32>} : memref<1x1xf32, #tpu.memory_space<vmem>>, vector<1x1xf32>,
    } else {
    }
    %c0_1 = arith.constant 0 : index
    %c0_2 = arith.constant 0 : index
    %4 = vector.load %arg2[%c0_1, %c0_2] : memref<8x128xf32, #tpu.memory_space<vmem>>, vector<8x128xf32>
    %5 = vector.extract_strided_slice %4 {offsets = [0, 0], sizes = [4, 128], strides = [1, 1]} : vector<8x128xf32> to vector<4x128xf32>
    %6 = vector.extract_strided_slice %4 {offsets = [4, 0], sizes = [4, 128], strides = [1, 1]} : vector<8x128xf32> to vector<4x128xf32>
    %c128_i32 = arith.constant 128 : i32
    %7 = arith.muli %arg0, %c128_i32 : i32
    %8 = tpu.iota {dimensions = array<i32: 1>} : vector<1x128xi32>
    %9 = vector.broadcast %7 : i32 to vector<1x128xi32>
    %10 = arith.addi %9, %8 : vector<1x128xi32>
    %11 = vector.broadcast %0 : i32 to vector<1x128xi32>
    %12 = arith.cmpi slt, %10, %11 : vector<1x128xi32>
    %13 = arith.subf %5, %6 : vector<4x128xf32>
    %14 = math.absf %13 : vector<4x128xf32>
    %cst = arith.constant dense<0.000000e+00> : vector<128xf32>
    %15 = vector.multi_reduction <add>, %14, %cst [0] : vector<4x128xf32> to vector<128xf32>
    %16 = vector.shape_cast %15 : vector<128xf32> to vector<1x128xf32>
    %17 = vector.extract_strided_slice %5 {offsets = [0, 0], sizes = [2, 128], strides = [1, 1]} : vector<4x128xf32> to vector<2x128xf32>
    %18 = vector.extract_strided_slice %5 {offsets = [2, 0], sizes = [2, 128], strides = [1, 1]} : vector<4x128xf32> to vector<2x128xf32>
    %19 = vector.extract_strided_slice %6 {offsets = [0, 0], sizes = [2, 128], strides = [1, 1]} : vector<4x128xf32> to vector<2x128xf32>
    %20 = vector.extract_strided_slice %6 {offsets = [2, 0], sizes = [2, 128], strides = [1, 1]} : vector<4x128xf32> to vector<2x128xf32>
    %21 = arith.subf %18, %17 : vector<2x128xf32>
    %22 = arith.subf %20, %19 : vector<2x128xf32>
    %23 = vector.extract_strided_slice %21 {offsets = [0, 0], sizes = [1, 128], strides = [1, 1]} : vector<2x128xf32> to vector<1x128xf32>
    %24 = vector.extract_strided_slice %21 {offsets = [1, 0], sizes = [1, 128], strides = [1, 1]} : vector<2x128xf32> to vector<1x128xf32>
    %25 = arith.mulf %23, %24 : vector<1x128xf32>
    %26 = vector.extract_strided_slice %22 {offsets = [0, 0], sizes = [1, 128], strides = [1, 1]} : vector<2x128xf32> to vector<1x128xf32>
    %27 = vector.extract_strided_slice %22 {offsets = [1, 0], sizes = [1, 128], strides = [1, 1]} : vector<2x128xf32> to vector<1x128xf32>
    %28 = arith.mulf %26, %27 : vector<1x128xf32>
    %29 = arith.maximumf %17, %19 : vector<2x128xf32>
    %30 = arith.minimumf %18, %20 : vector<2x128xf32>
    %31 = arith.subf %30, %29 : vector<2x128xf32>
    %cst_3 = arith.constant 0.000000e+00 : f32
    %32 = vector.broadcast %cst_3 : f32 to vector<2x128xf32>
    %33 = arith.maximumf %31, %32 : vector<2x128xf32>
    %34 = vector.extract_strided_slice %33 {offsets = [0, 0], sizes = [1, 128], strides = [1, 1]} : vector<2x128xf32> to vector<1x128xf32>
    %35 = vector.extract_strided_slice %33 {offsets = [1, 0], sizes = [1, 128], strides = [1, 1]} : vector<2x128xf32> to vector<1x128xf32>
    %36 = arith.mulf %34, %35 : vector<1x128xf32>
    %37 = arith.minimumf %17, %19 : vector<2x128xf32>
    %38 = arith.maximumf %18, %20 : vector<2x128xf32>
    %39 = arith.subf %38, %37 : vector<2x128xf32>
    %cst_4 = arith.constant 0.000000e+00 : f32
    %40 = vector.broadcast %cst_4 : f32 to vector<2x128xf32>
    %41 = arith.maximumf %39, %40 : vector<2x128xf32>
    %42 = vector.extract_strided_slice %41 {offsets = [0, 0], sizes = [1, 128], strides = [1, 1]} : vector<2x128xf32> to vector<1x128xf32>
    %43 = vector.extract_strided_slice %41 {offsets = [1, 0], sizes = [1, 128], strides = [1, 1]} : vector<2x128xf32> to vector<1x128xf32>
    %44 = arith.mulf %42, %43 : vector<1x128xf32>
    %45 = arith.addf %25, %28 : vector<1x128xf32>
    %46 = arith.subf %45, %36 : vector<1x128xf32>
    %cst_5 = arith.constant 1.000000e+00 : f32
    %47 = vector.broadcast %cst_5 : f32 to vector<1x128xf32>
    %48 = arith.select %12, %46, %47 : vector<1x128xi1>, vector<1x128xf32>
    %cst_6 = arith.constant 1.000000e+00 : f32
    %49 = vector.broadcast %cst_6 : f32 to vector<1x128xf32>
    %50 = arith.select %12, %44, %49 : vector<1x128xi1>, vector<1x128xf32>
    %51 = tpu.reciprocal %48 : vector<1x128xf32> -> vector<1x128xf32>
    %52 = arith.mulf %36, %51 : vector<1x128xf32>
    %53 = arith.subf %50, %48 : vector<1x128xf32>
    %54 = tpu.reciprocal %50 : vector<1x128xf32> -> vector<1x128xf32>
    %55 = arith.mulf %53, %54 : vector<1x128xf32>
    %56 = arith.subf %52, %55 : vector<1x128xf32>
    %cst_7 = arith.constant 1.000000e+00 : f32
    %57 = vector.broadcast %cst_7 : f32 to vector<1x128xf32>
    %58 = arith.subf %57, %56 : vector<1x128xf32>
    %cst_8 = arith.constant 5.000000e+00 : f32
    %59 = vector.broadcast %cst_8 : f32 to vector<1x128xf32>
    %60 = arith.mulf %59, %16 : vector<1x128xf32>
    %cst_9 = arith.constant 2.000000e+00 : f32
    %61 = vector.broadcast %cst_9 : f32 to vector<1x128xf32>
    %62 = arith.mulf %61, %58 : vector<1x128xf32>
    %63 = arith.addf %60, %62 : vector<1x128xf32>
    %cst_10 = arith.constant 0.000000e+00 : f32
    %64 = vector.broadcast %cst_10 : f32 to vector<1x128xf32>
    %65 = arith.select %12, %63, %64 : vector<1x128xi1>, vector<1x128xf32>
    %c0_11 = arith.constant 0 : index
    %c0_12 = arith.constant 0 : index
    %66 = vector.load %arg3[%c0_11, %c0_12] : memref<1x1xf32, #tpu.memory_space<vmem>>, vector<1x1xf32>
    %cst_13 = arith.constant dense<0.000000e+00> : vector<1xf32>
    %67 = vector.multi_reduction <add>, %65, %cst_13 [1] : vector<1x128xf32> to vector<1xf32>
    %68 = vector.shape_cast %67 : vector<1xf32> to vector<1x1xf32>
    %69 = arith.addf %66, %68 : vector<1x1xf32>
    %c0_14 = arith.constant 0 : index
    %c0_15 = arith.constant 0 : index
    %70 = vector.load %arg3[%c0_14, %c0_15] : memref<1x1xf32, #tpu.memory_space<vmem>>, vector<1x1xf32>
    tpu.vector_store %arg3[%c0_14, %c0_15], %69 {strides = array<i32>} : memref<1x1xf32, #tpu.memory_space<vmem>>, vector<1x1xf32>,
    %c0_i32_16 = arith.constant 0 : i32
    %71 = arith.cmpi eq, %arg0, %c0_i32_16 : i32
    %72 = arith.extui %71 : i1 to i32
    %c0_i32_17 = arith.constant 0 : i32
    %73 = arith.cmpi ne, %72, %c0_i32_17 : i32
    scf.if %73 {
      %c0_18 = arith.constant 0 : index
      %c0_19 = arith.constant 0 : index
      %74 = vector.load %arg3[%c0_18, %c0_19] : memref<1x1xf32, #tpu.memory_space<vmem>>, vector<1x1xf32>
      %75 = arith.sitofp %0 : i32 to f32
      %cst_20 = arith.constant 1.000000e+00 : f32
      %76 = arith.divf %cst_20, %75 : f32
      %77 = vector.broadcast %76 : f32 to vector<1x1xf32>
      %78 = arith.mulf %74, %77 : vector<1x1xf32>
      %c0_21 = arith.constant 0 : index
      %c0_22 = arith.constant 0 : index
      %79 = vector.load %arg3[%c0_21, %c0_22] : memref<1x1xf32, #tpu.memory_space<vmem>>, vector<1x1xf32>
      tpu.vector_store %arg3[%c0_21, %c0_22], %78 {strides = array<i32>} : memref<1x1xf32, #tpu.memory_space<vmem>>, vector<1x1xf32>,
    } else {
    }
    return
  }
  func.func @transform_0(%arg0: i32, %arg1: memref<1xi32, #tpu.memory_space<smem>>) -> (i32, i32) {
    %c0_i32 = arith.constant 0 : i32
    %c0_i32_0 = arith.constant 0 : i32
    return %c0_i32, %arg0 : i32, i32
  }
  func.func @transform_1(%arg0: i32, %arg1: memref<1xi32, #tpu.memory_space<smem>>) -> (i32, i32) {
    %c0_i32 = arith.constant 0 : i32
    %c0_i32_0 = arith.constant 0 : i32
    %c0_i32_1 = arith.constant 0 : i32
    return %c0_i32, %c0_i32_0 : i32, i32
  }
}

</mosaic_0001>

<bundles_post_ra>
// kernel: tpu_custom_call.1
= control target key start
LH: loop header
LB: loop body
LE: loop exit
PB: predicated region body
PF: predicated region fallthrough
CT: control target
= control target key end

     0   :  { %8 = vsyncpa [#allocation5], 0  ;;  %s291_s0 = inlined_call_operand.<no memory space> [shape: s32[1], index: 0, kind: input, shape index: {}]   ;;  %s292_s1 = inlined_call_operand.hbm [shape: f32[8,128], index: 1, kind: input, shape index: {}]   ;;  %s293_s2 = inlined_call_operand.hbm [shape: f32[1,1], index: 2, kind: output, shape index: {}]  }
   0x1   :  { %9 = vsyncpa [#allocation6], 0  ;;  %s15_s11 = sshll.u32 %s292_s1, 4  ;;  %s239_s12 = smov [#allocation4]   ;;  %s16_s11 = int_to_ptr.hbm [resolvable:$true] %s15_s11 }
   0x2   :  { %s17_s13 = sshll.u32 %s239_s12, 4  ;;  %s18_s13 = int_to_ptr.vmem [resolvable:$true] %s17_s13 }
   0x3   :  { %20 = dma.hbm_to_vmem [thread:$0]  %s16_s11, 128, %s18_s13, [#allocation5]  }
   0x4   :  { %235 = dma.done.wait [#allocation5], 128  }
   0x5   :  { %236 = vsyncadd [#allocation5], 4294967168  ;;  %vm30_vm0 = vcmask 0   ;;  %v240_v0 = vmov 0.0   ;;  %v32_v1 = vld [vmem:[#allocation4] sm:$0xff]  ;;  %v34_v8 = vlaneseq  ;;  %vm45_vm1 = vcmask 1043456   ;;  %s139_s17 = scvt.s32.f32 %s291_s0 }
   0x6   :  { %31 = vst.msk [vmem:[#allocation7] sm:$0x1] %vm30_vm0, %v240_v0  ;;  %v41_v2 = vrot.slane %v32_v1, 4  ;;  %v53_v3 = vrot.slane %v32_v1, 6  ;;  %v38_v18 = vstv %s291_s0  ;;  %vm125_vm15 = vcmask 1042434   ;;  %s241_s18 = smov [#allocation7]  }
   0x7   :  { %v35_v16 = vand.u32 127, %v34_v8  ;;  %v140_v32 = vstv %s139_s17  ;;  %s164_s19 = sshll.u32 %s241_s18, 4  ;;  %s166_s22 = sshll.u32 %s293_s2, 4  ;;  %s165_s19 = int_to_ptr.vmem [resolvable:$true] %s164_s19  ;;  %s167_s22 = int_to_ptr.hbm [resolvable:$true] %s166_s22 }
   0x8   :  { %v43_v4 = vsub.f32 %v32_v1, %v41_v2  ;;  %v55_v5 = vsub.f32 %v32_v1, %v53_v3  ;;  %v60_v6 = vmax.f32 %v32_v1, %v41_v2  ;;  %v61_v7 = vmin.f32 %v32_v1, %v41_v2 }
   0x9   :  { %vm267_vm2 = vcmp.lt.s32.totalorder %v35_v16, %v38_v18  ;;  %vm146_vm5 = vweird.f32 %v140_v32  ;;  %v152_v45 = vand.u32 2147483648, %v140_v32  ;;  %v150_v48 = vand.u32 2147483647, %v140_v32 }
   0xa   :  { %v44_v9 = vand.u32 2147483647, %v43_v4  ;;  %v57_v10 = vrot.slane %v55_v5, 1  ;;  %v63_v11 = vrot.slane %v60_v6, 6  ;;  %v72_v12 = vrot.slane %v61_v7, 6 }
   0xb   :  { %v153_v58 = vor.u32 1.1754944e-38, %v152_v45  ;;  %vm151_vm13 = vcmp.eq.f32.partialorder %v150_v48, 8.507059e+37 }
   0xc   :  { %v59_v13 = vmul.f32 %v57_v10, %v55_v5  ;;  %v65_v14 = vsub.f32 %v61_v7, %v63_v11  ;;  %v74_v15 = vsub.f32 %v60_v6, %v72_v12  ;;  %v46_v17 = vsel %vm45_vm1, %v44_v9, 0.0 }
   0xd   :  { %v47_v22 = vrot.slane %v46_v17, 4 }
   0xe   :  { %v66_v19 = vmax.f32 %v65_v14, 0.0  ;;  %v75_v20 = vmax.f32 %v74_v15, 0.0  ;;  %v81_v21 = vrot.slane %v59_v13, 4  ;;  %v124_v15 = vld [vmem:[#allocation7] sm:$0x1] }
   0xf   :  { %v48_v29 = vadd.f32 %v47_v22, %v46_v17 }
  0x10   :  { %v68_v23 = vrot.slane %v66_v19, 1  ;;  %v77_v24 = vrot.slane %v75_v20, 1  ;;  %v83_v25 = vadd.f32 %v81_v21, %v59_v13 }
  0x11   :  { %v49_v34 = vrot.slane %v48_v29, 2 }
  0x12   :  { %v70_v27 = vmul.f32 %v68_v23, %v66_v19  ;;  %v79_v28 = vmul.f32 %v77_v24, %v75_v20 }
  0x13   :  { %v50_v37 = vadd.f32 %v49_v34, %v48_v29 }
  0x14   :  { %v84_v30 = vsub.f32 %v83_v25, %v70_v27  ;;  %v86_v31 = vsel %vm267_vm2, %v79_v28, 1.0 }
  0x15   :  { %181 = vrcp.f32 %v86_v31  ;;  %vm108_vm3 = vweird.f32 %v86_v31  ;;  %v112_v39 = vand.u32 2147483647, %v86_v31  ;;  %v114_v41 = vand.u32 2147483648, %v86_v31 }
  0x16   :  { %v85_v33 = vsel %vm267_vm2, %v84_v30, 1.0  ;;  %183 = vrcp.f32 %v140_v32  ;;  %v51_v61 = vrot.slane %v50_v37, 1 }
  0x17   :  { %185 = vrcp.f32 %v85_v33  ;;  %vm92_vm4 = vweird.f32 %v85_v33  ;;  %v98_v46 = vand.u32 2147483648, %v85_v33  ;;  %v96_v50 = vand.u32 2147483647, %v85_v33 }
  0x18   :  { %v102_v52 = vsub.f32 %v86_v31, %v85_v33  ;;  %v115_v54 = vor.u32 1.1754944e-38, %v114_v41  ;;  %vm113_vm10 = vcmp.eq.f32.partialorder %v112_v39, 8.507059e+37  ;;  %v52_v6 = vadd.f32 %v51_v61, %v50_v37 }
  0x19   :  { %v99_v59 = vor.u32 1.1754944e-38, %v98_v46  ;;  %vm97_vm14 = vcmp.eq.f32.partialorder %v96_v50, 8.507059e+37 }
  0x1a   :  { %v120_v10 = vmul.f32 5.0, %v52_v6 }
  0x1b   :  { %v182_v35 = vpop.eup %181 }
  0x1c   :  { %v184_v36 = vpop.eup %183  ;;  %v104_v38 = vmul.f32 %v182_v35, %v86_v31  ;;  %vm109_vm6 = vweird.f32 %v182_v35 }
  0x1d   :  { %v186_v40 = vpop.eup %185  ;;  %v142_v42 = vmul.f32 %v184_v36, %v140_v32  ;;  %vm147_vm7 = vweird.f32 %v184_v36  ;;  %vm276_vm9 = vmor %vm108_vm3, %vm109_vm6 }
  0x1e   :  { %v88_v43 = vmul.f32 %v186_v40, %v85_v33  ;;  %v105_v44 = vsub.f32 1.0, %v104_v38  ;;  %vm93_vm8 = vweird.f32 %v186_v40  ;;  %vm148_vm11 = vmor %vm146_vm5, %vm147_vm7 }
  0x1f   :  { %v143_v47 = vsub.f32 1.0, %v142_v42  ;;  %vm94_vm12 = vmor %vm92_vm4, %vm93_vm8 }
  0x20   :  { %v89_v49 = vsub.f32 1.0, %v88_v43  ;;  %v106_v51 = vmul.f32 %v182_v35, %v105_v44 }
  0x21   :  { %v144_v55 = vmul.f32 %v184_v36, %v143_v47 }
  0x22   :  { %v90_v56 = vmul.f32 %v186_v40, %v89_v49  ;;  %v107_v57 = vadd.f32 %v182_v35, %v106_v51 }
  0x23   :  { %v145_v60 = vadd.f32 %v184_v36, %v144_v55 }
  0x24   :  { %v91_v62 = vadd.f32 %v186_v40, %v90_v56  ;;  %v111_v63 = vsel %vm276_vm9, %v182_v35, %v107_v57 }
  0x25   :  { %v116_v0 = vsel %vm113_vm10, %v115_v54, %v111_v63  ;;  %v149_v1 = vsel %vm148_vm11, %v184_v36, %v145_v60 }
  0x26   :  { %v95_v2 = vsel %vm94_vm12, %v186_v40, %v91_v62  ;;  %v117_v3 = vmul.f32 %v116_v0, %v102_v52  ;;  %v154_v4 = vsel %vm151_vm13, %v153_v58, %v149_v1 }
  0x27   :  { %v100_v5 = vsel %vm97_vm14, %v99_v59, %v95_v2  ;;  %176 = vpush %v154_v4 }
  0x28   :  { %v101_v7 = vmul.f32 %v100_v5, %v70_v27 }
  0x2a   :  { %v118_v8 = vsub.f32 %v101_v7, %v117_v3 }
  0x2c   :  { %v119_v9 = vsub.f32 1.0, %v118_v8 }
  0x2e   :  { %v121_v11 = vmul.f32 2.0, %v119_v9 }
  0x30   :  { %v122_v12 = vadd.f32 %v121_v11, %v120_v10 }
  0x32   :  { %v123_v13 = vsel %vm267_vm2, %v122_v12, 0.0 }
  0x33   :  { %v126_v14 = vsel %vm125_vm15, %v123_v13, 0.0 }
  0x34   :  { %127 = vadd.xlane.f32.xlu0 %v126_v14 }
  0x58   :  { %s177_s0 = spop %176 }
  0x59   :  { %v156_v19 = vstv %s177_s0 }
  0xa7   :  { %v128_v16 = vpop.xlane.xlu0 %127 }
  0xa8   :  { %v130_v17 = vperm.slane %v128_v16, 2 }
  0xaa   :  { %v132_v18 = vadd.f32 %v130_v17, %v124_v15 }
  0xac   :  { %134 = vst.msk [vmem:[#allocation7] sm:$0x1] %vm30_vm0, %v132_v18 }
  0xb3   :  { %v138_v20 = vld [vmem:[#allocation7] sm:$0x1] }
  0xb4   :  { %v157_v21 = vmul.f32 %v156_v19, %v138_v20 }
  0xb6   :  { %158 = vst.msk [vmem:[#allocation7] sm:$0x1] %vm30_vm0, %v157_v21 }
  0xb7   :  { %169 = dma.vmem_to_hbm [thread:$0]  %s165_s19, 16, %s167_s22, [#allocation6]  }
  0xb8   :  { %237 = dma.done.wait [#allocation6], 16  }
  0xb9   :  { %238 = vsyncadd [#allocation6], 4294967280 }
  0xba   :  { %174 = vsyncpa [#allocation5], 1 }
  0xbb   :  { %175 = vsyncpa [#allocation6], 1 }

</bundles_post_ra>
